<compile_context>
chip_gen: v6e
topology: v6e:2x2x1
jax: 0.10.0
libtpu: 0.0.40
codegen_flags: <defaults>
</compile_context>

<pallas_src>
import jax
import jax.numpy as jnp
from jax.experimental import pallas as pl
from jax.experimental.pallas import tpu as pltpu

LANE = 128


def _round_up(x, m):
    return ((x + m - 1) // m) * m


def _cdiv(a, b):
    return -(-a // b)


def _chart_generator_kernel(x_ref,
                            w1_ref, b1_ref,
                            w2_ref, b2_ref,
                            w3_ref, b3_ref,
                            w4_ref, b4_ref,
                            w5_ref, b5_ref,
                            o_ref):
    """Fused (Linear+ReLU)x4 -> Linear -> softmax on one [tile, *] batch slab."""
    zero = jnp.bfloat16(0)

    def layer_relu(h_bf16, w_ref, b_ref):
        # bf16 x bf16 matmul on the MXU with f32 accumulation; bf16 epilogue
        # (single downcast + bf16 bias add + bf16 ReLU) to relieve the VALU slot.
        acc = jnp.dot(h_bf16, w_ref[...], preferred_element_type=jnp.float32)
        return jnp.maximum(acc.astype(jnp.bfloat16) + b_ref[...], zero)

    h = x_ref[...].astype(jnp.bfloat16)          # [T, input_dim]
    h = layer_relu(h, w1_ref, b1_ref)            # [T, 256]
    h = layer_relu(h, w2_ref, b2_ref)            # [T, 512]
    h = layer_relu(h, w3_ref, b3_ref)            # [T, 256]
    h = layer_relu(h, w4_ref, b4_ref)            # [T, 128]

    # Final layer in f32; padded output columns carry -1e30 baked into b5,
    # so no in-kernel masking pass is needed (exp -> 0 for those columns).
    logits = jnp.dot(h, w5_ref[...],
                     preferred_element_type=jnp.float32) + b5_ref[...]   # [T, Yp]

    m = jnp.max(logits, axis=-1, keepdims=True)
    e = jnp.exp(logits - m)
    denom = jnp.sum(e, axis=-1, keepdims=True)
    o_ref[...] = (e * pl.reciprocal(denom, approx=True)).astype(o_ref.dtype)


def _choose_tiling(B, tile_batch):
    """Balanced batch tiling: minimal padding, >=2 (even) steps for v7x megacore."""
    num_steps = max(1, _cdiv(B, tile_batch))
    if B > 8:
        num_steps = max(num_steps, 2)     # both v7x TensorCores get work
        if num_steps % 2:
            num_steps += 1                # even step count balances the 2 TCs
    tile = _round_up(_cdiv(B, num_steps), 8)
    Bp = tile * num_steps
    return tile, Bp, num_steps


def chart_generator_forward(x, params, *, tile_batch=2048):
    """x: [B, input_dim] float32. params: dict of [in,out] weights and [1,out] biases."""
    B, input_dim = x.shape
    y_dim = params["w5"].shape[1]
    Yp = _round_up(y_dim, LANE)           # lane-dense output width

    tile, Bp, num_steps = _choose_tiling(B, tile_batch)

    # Only batch padding (at most 8*num_steps - B dead rows); x stays f32/unpadded
    # in the feature dim and is cast to bf16 inside the kernel.
    if Bp != B:
        x = jnp.pad(x, ((0, Bp - B), (0, 0)))

    # --- weights / biases: bf16 weights, bf16 biases for the ReLU layers, f32 b5
    #     with -1e30 in the padded columns (softmax mask baked into the bias). ---
    w1 = params["w1"].astype(jnp.bfloat16)
    w2 = params["w2"].astype(jnp.bfloat16)
    w3 = params["w3"].astype(jnp.bfloat16)
    w4 = params["w4"].astype(jnp.bfloat16)
    w5 = jnp.zeros((params["w5"].shape[0], Yp), jnp.bfloat16)
    w5 = w5.at[:, :y_dim].set(params["w5"].astype(jnp.bfloat16))

    b1 = params["b1"].astype(jnp.bfloat16)
    b2 = params["b2"].astype(jnp.bfloat16)
    b3 = params["b3"].astype(jnp.bfloat16)
    b4 = params["b4"].astype(jnp.bfloat16)
    b5 = jnp.full((1, Yp), -1e30, jnp.float32)
    b5 = b5.at[:, :y_dim].set(params["b5"].astype(jnp.float32))

    # Weights/biases have a constant block index -> fetched once and kept
    # VMEM-resident across all batch-tile grid steps.
    def const_spec(arr):
        return pl.BlockSpec(arr.shape, lambda i: (0, 0))

    out = pl.pallas_call(
        _chart_generator_kernel,
        out_shape=jax.ShapeDtypeStruct((Bp, Yp), jnp.float32),
        grid=(num_steps,),
        in_specs=[
            pl.BlockSpec((tile, input_dim), lambda i: (i, 0)),   # x tile (full feat dim)
            const_spec(w1), const_spec(b1),
            const_spec(w2), const_spec(b2),
            const_spec(w3), const_spec(b3),
            const_spec(w4), const_spec(b4),
            const_spec(w5), const_spec(b5),
        ],
        out_specs=pl.BlockSpec((tile, Yp), lambda i: (i, 0)),
        compiler_params=pltpu.CompilerParams(
            dimension_semantics=("parallel",)),
    )(x, w1, b1, w2, b2, w3, b3, w4, b4, w5, b5)

    # Strip batch / output-column padding.
    return out[:B, :y_dim]


def init_params(key, input_dim, y_dim):
    """nn.Linear-style init (uniform +/- 1/sqrt(fan_in)); weights stored as [in, out]."""
    dims = [input_dim, 256, 512, 256, 128, y_dim]
    params = {}
    keys = jax.random.split(key, 2 * (len(dims) - 1))
    for li in range(len(dims) - 1):
        fan_in, fan_out = dims[li], dims[li + 1]
        bound = 1.0 / jnp.sqrt(float(fan_in))
        wk, bk = keys[2 * li], keys[2 * li + 1]
        params[f"w{li+1}"] = jax.random.uniform(
            wk, (fan_in, fan_out), jnp.float32, -bound, bound)
        params[f"b{li+1}"] = jax.random.uniform(
            bk, (1, fan_out), jnp.float32, -bound, bound)
    return params


def reference_forward(x, params):
    """Pure-JAX f32 reference of the PyTorch forward."""
    h = jnp.maximum(x @ params["w1"] + params["b1"], 0.0)
    h = jnp.maximum(h @ params["w2"] + params["b2"], 0.0)
    h = jnp.maximum(h @ params["w3"] + params["b3"], 0.0)
    h = jnp.maximum(h @ params["w4"] + params["b4"], 0.0)
    logits = h @ params["w5"] + params["b5"]
    return jax.nn.softmax(logits, axis=1)


if __name__ == "__main__":
    key = jax.random.PRNGKey(0)
    k_param, k_x = jax.random.split(key)

    batch, input_dim, y_dim = 16, 32, 16
    params = init_params(k_param, input_dim, y_dim)
    x = jax.random.normal(k_x, (batch, input_dim), jnp.float32)

    out = chart_generator_forward(x, params)
    out = jax.block_until_ready(out)

    ref = reference_forward(x, params)
    assert out.shape == (batch, y_dim)
    # bf16 matmuls + bf16 epilogue + approx reciprocal -> looser tolerance vs f32 ref.
    assert jnp.allclose(out, ref, atol=2.5e-2), "mismatch vs reference"
    # softmax rows still sum to ~1 (approx reciprocal error is ~1e-4 relative).
    assert jnp.allclose(jnp.sum(out, axis=1), jnp.ones((batch,)), atol=5e-3)

    print("KERNEL_OK")
</pallas_src>

<mosaic_0001>
module attributes {stable_mosaic.version = 11 : i64} {
  func.func @_chart_generator_kernel(%arg0: i32, %arg1: memref<8x32xf32, #tpu.memory_space<vmem>>, %arg2: memref<32x256xbf16, #tpu.memory_space<vmem>>, %arg3: memref<1x256xbf16, #tpu.memory_space<vmem>>, %arg4: memref<256x512xbf16, #tpu.memory_space<vmem>>, %arg5: memref<1x512xbf16, #tpu.memory_space<vmem>>, %arg6: memref<512x256xbf16, #tpu.memory_space<vmem>>, %arg7: memref<1x256xbf16, #tpu.memory_space<vmem>>, %arg8: memref<256x128xbf16, #tpu.memory_space<vmem>>, %arg9: memref<1x128xbf16, #tpu.memory_space<vmem>>, %arg10: memref<128x128xbf16, #tpu.memory_space<vmem>>, %arg11: memref<1x128xf32, #tpu.memory_space<vmem>>, %arg12: memref<8x128xf32, #tpu.memory_space<vmem>>) attributes {dimension_semantics = [#tpu.dimension_semantics<parallel>], iteration_bounds = array<i64: 2>, scalar_prefetch = 0 : i64, scratch_operands = 0 : i64, tpu.core_type = #tpu.core_type<tc>, window_params = [{transform_indices = @transform_0, window_bounds = array<i64: 8, 32>}, {pipeline_mode = #tpu.pipeline_mode<synchronous>, transform_indices = @transform_1, window_bounds = array<i64: 32, 256>}, {pipeline_mode = #tpu.pipeline_mode<synchronous>, transform_indices = @transform_2, window_bounds = array<i64: 1, 256>}, {pipeline_mode = #tpu.pipeline_mode<synchronous>, transform_indices = @transform_3, window_bounds = array<i64: 256, 512>}, {pipeline_mode = #tpu.pipeline_mode<synchronous>, transform_indices = @transform_4, window_bounds = array<i64: 1, 512>}, {pipeline_mode = #tpu.pipeline_mode<synchronous>, transform_indices = @transform_5, window_bounds = array<i64: 512, 256>}, {pipeline_mode = #tpu.pipeline_mode<synchronous>, transform_indices = @transform_6, window_bounds = array<i64: 1, 256>}, {pipeline_mode = #tpu.pipeline_mode<synchronous>, transform_indices = @transform_7, window_bounds = array<i64: 256, 128>}, {pipeline_mode = #tpu.pipeline_mode<synchronous>, transform_indices = @transform_8, window_bounds = array<i64: 1, 128>}, {pipeline_mode = #tpu.pipeline_mode<synchronous>, transform_indices = @transform_9, window_bounds = array<i64: 128, 128>}, {pipeline_mode = #tpu.pipeline_mode<synchronous>, transform_indices = @transform_10, window_bounds = array<i64: 1, 128>}, {transform_indices = @transform_11, window_bounds = array<i64: 8, 128>}]} {
    %c0 = arith.constant 0 : index
    %c0_0 = arith.constant 0 : index
    %0 = vector.load %arg1[%c0, %c0_0] : memref<8x32xf32, #tpu.memory_space<vmem>>, vector<8x32xf32>
    %1 = arith.truncf %0 : vector<8x32xf32> to vector<8x32xbf16>
    %c0_1 = arith.constant 0 : index
    %c0_2 = arith.constant 0 : index
    %2 = vector.load %arg2[%c0_1, %c0_2] : memref<32x256xbf16, #tpu.memory_space<vmem>>, vector<32x256xbf16>
    %cst = arith.constant dense<0.000000e+00> : vector<8x256xf32>
    %3 = tpu.matmul %1, %2, %cst {dimension_numbers = #tpu.dot_dimension_numbers<[1], [0], [0], [1], [0, 0, 1, 1], [], []>} : vector<8x32xbf16>, vector<32x256xbf16>, vector<8x256xf32> -> vector<8x256xf32>
    %4 = arith.truncf %3 : vector<8x256xf32> to vector<8x256xbf16>
    %c0_3 = arith.constant 0 : index
    %c0_4 = arith.constant 0 : index
    %5 = vector.load %arg3[%c0_3, %c0_4] : memref<1x256xbf16, #tpu.memory_space<vmem>>, vector<1x256xbf16>
    %6 = vector.broadcast %5 : vector<1x256xbf16> to vector<8x256xbf16>
    %7 = arith.addf %4, %6 : vector<8x256xbf16>
    %cst_5 = arith.constant 0.000000e+00 : bf16
    %8 = vector.broadcast %cst_5 : bf16 to vector<8x256xbf16>
    %9 = arith.maximumf %7, %8 : vector<8x256xbf16>
    %c0_6 = arith.constant 0 : index
    %c0_7 = arith.constant 0 : index
    %10 = vector.load %arg4[%c0_6, %c0_7] : memref<256x512xbf16, #tpu.memory_space<vmem>>, vector<256x512xbf16>
    %cst_8 = arith.constant dense<0.000000e+00> : vector<8x512xf32>
    %11 = tpu.matmul %9, %10, %cst_8 {dimension_numbers = #tpu.dot_dimension_numbers<[1], [0], [0], [1], [0, 0, 1, 1], [], []>} : vector<8x256xbf16>, vector<256x512xbf16>, vector<8x512xf32> -> vector<8x512xf32>
    %12 = arith.truncf %11 : vector<8x512xf32> to vector<8x512xbf16>
    %c0_9 = arith.constant 0 : index
    %c0_10 = arith.constant 0 : index
    %13 = vector.load %arg5[%c0_9, %c0_10] : memref<1x512xbf16, #tpu.memory_space<vmem>>, vector<1x512xbf16>
    %14 = vector.broadcast %13 : vector<1x512xbf16> to vector<8x512xbf16>
    %15 = arith.addf %12, %14 : vector<8x512xbf16>
    %cst_11 = arith.constant 0.000000e+00 : bf16
    %16 = vector.broadcast %cst_11 : bf16 to vector<8x512xbf16>
    %17 = arith.maximumf %15, %16 : vector<8x512xbf16>
    %c0_12 = arith.constant 0 : index
    %c0_13 = arith.constant 0 : index
    %18 = vector.load %arg6[%c0_12, %c0_13] : memref<512x256xbf16, #tpu.memory_space<vmem>>, vector<512x256xbf16>
    %cst_14 = arith.constant dense<0.000000e+00> : vector<8x256xf32>
    %19 = tpu.matmul %17, %18, %cst_14 {dimension_numbers = #tpu.dot_dimension_numbers<[1], [0], [0], [1], [0, 0, 1, 1], [], []>} : vector<8x512xbf16>, vector<512x256xbf16>, vector<8x256xf32> -> vector<8x256xf32>
    %20 = arith.truncf %19 : vector<8x256xf32> to vector<8x256xbf16>
    %c0_15 = arith.constant 0 : index
    %c0_16 = arith.constant 0 : index
    %21 = vector.load %arg7[%c0_15, %c0_16] : memref<1x256xbf16, #tpu.memory_space<vmem>>, vector<1x256xbf16>
    %22 = vector.broadcast %21 : vector<1x256xbf16> to vector<8x256xbf16>
    %23 = arith.addf %20, %22 : vector<8x256xbf16>
    %cst_17 = arith.constant 0.000000e+00 : bf16
    %24 = vector.broadcast %cst_17 : bf16 to vector<8x256xbf16>
    %25 = arith.maximumf %23, %24 : vector<8x256xbf16>
    %c0_18 = arith.constant 0 : index
    %c0_19 = arith.constant 0 : index
    %26 = vector.load %arg8[%c0_18, %c0_19] : memref<256x128xbf16, #tpu.memory_space<vmem>>, vector<256x128xbf16>
    %cst_20 = arith.constant dense<0.000000e+00> : vector<8x128xf32>
    %27 = tpu.matmul %25, %26, %cst_20 {dimension_numbers = #tpu.dot_dimension_numbers<[1], [0], [0], [1], [0, 0, 1, 1], [], []>} : vector<8x256xbf16>, vector<256x128xbf16>, vector<8x128xf32> -> vector<8x128xf32>
    %28 = arith.truncf %27 : vector<8x128xf32> to vector<8x128xbf16>
    %c0_21 = arith.constant 0 : index
    %c0_22 = arith.constant 0 : index
    %29 = vector.load %arg9[%c0_21, %c0_22] : memref<1x128xbf16, #tpu.memory_space<vmem>>, vector<1x128xbf16>
    %30 = vector.broadcast %29 : vector<1x128xbf16> to vector<8x128xbf16>
    %31 = arith.addf %28, %30 : vector<8x128xbf16>
    %cst_23 = arith.constant 0.000000e+00 : bf16
    %32 = vector.broadcast %cst_23 : bf16 to vector<8x128xbf16>
    %33 = arith.maximumf %31, %32 : vector<8x128xbf16>
    %c0_24 = arith.constant 0 : index
    %c0_25 = arith.constant 0 : index
    %34 = vector.load %arg10[%c0_24, %c0_25] : memref<128x128xbf16, #tpu.memory_space<vmem>>, vector<128x128xbf16>
    %cst_26 = arith.constant dense<0.000000e+00> : vector<8x128xf32>
    %35 = tpu.matmul %33, %34, %cst_26 {dimension_numbers = #tpu.dot_dimension_numbers<[1], [0], [0], [1], [0, 0, 1, 1], [], []>} : vector<8x128xbf16>, vector<128x128xbf16>, vector<8x128xf32> -> vector<8x128xf32>
    %c0_27 = arith.constant 0 : index
    %c0_28 = arith.constant 0 : index
    %36 = vector.load %arg11[%c0_27, %c0_28] : memref<1x128xf32, #tpu.memory_space<vmem>>, vector<1x128xf32>
    %37 = vector.broadcast %36 : vector<1x128xf32> to vector<8x128xf32>
    %38 = arith.addf %35, %37 : vector<8x128xf32>
    %cst_29 = arith.constant dense<0xFF800000> : vector<8xf32>
    %39 = vector.multi_reduction <maximumf>, %38, %cst_29 [1] : vector<8x128xf32> to vector<8xf32>
    %40 = vector.shape_cast %39 : vector<8xf32> to vector<8x1xf32>
    %41 = vector.broadcast %40 : vector<8x1xf32> to vector<8x128xf32>
    %42 = arith.subf %38, %41 : vector<8x128xf32>
    %43 = math.exp %42 : vector<8x128xf32>
    %cst_30 = arith.constant dense<0.000000e+00> : vector<8xf32>
    %44 = vector.multi_reduction <add>, %43, %cst_30 [1] : vector<8x128xf32> to vector<8xf32>
    %45 = vector.shape_cast %44 : vector<8xf32> to vector<8x1xf32>
    %46 = tpu.reciprocal %45 {approx = true} : vector<8x1xf32> -> vector<8x1xf32>
    %47 = vector.broadcast %46 : vector<8x1xf32> to vector<8x128xf32>
    %48 = arith.mulf %43, %47 : vector<8x128xf32>
    %c0_31 = arith.constant 0 : index
    %c0_32 = arith.constant 0 : index
    %49 = vector.load %arg12[%c0_31, %c0_32] : memref<8x128xf32, #tpu.memory_space<vmem>>, vector<8x128xf32>
    tpu.vector_store %arg12[%c0_31, %c0_32], %48 {strides = array<i32>} : memref<8x128xf32, #tpu.memory_space<vmem>>, vector<8x128xf32>,
    return
  }
  func.func @transform_0(%arg0: i32) -> (i32, i32) {
    %c0_i32 = arith.constant 0 : i32
    %c0_i32_0 = arith.constant 0 : i32
    return %arg0, %c0_i32 : i32, i32
  }
  func.func @transform_1(%arg0: i32) -> (i32, i32) {
    %c0_i32 = arith.constant 0 : i32
    %c0_i32_0 = arith.constant 0 : i32
    %c0_i32_1 = arith.constant 0 : i32
    return %c0_i32, %c0_i32_0 : i32, i32
  }
  func.func @transform_2(%arg0: i32) -> (i32, i32) {
    %c0_i32 = arith.constant 0 : i32
    %c0_i32_0 = arith.constant 0 : i32
    %c0_i32_1 = arith.constant 0 : i32
    return %c0_i32, %c0_i32_0 : i32, i32
  }
  func.func @transform_3(%arg0: i32) -> (i32, i32) {
    %c0_i32 = arith.constant 0 : i32
    %c0_i32_0 = arith.constant 0 : i32
    %c0_i32_1 = arith.constant 0 : i32
    return %c0_i32, %c0_i32_0 : i32, i32
  }
  func.func @transform_4(%arg0: i32) -> (i32, i32) {
    %c0_i32 = arith.constant 0 : i32
    %c0_i32_0 = arith.constant 0 : i32
    %c0_i32_1 = arith.constant 0 : i32
    return %c0_i32, %c0_i32_0 : i32, i32
  }
  func.func @transform_5(%arg0: i32) -> (i32, i32) {
    %c0_i32 = arith.constant 0 : i32
    %c0_i32_0 = arith.constant 0 : i32
    %c0_i32_1 = arith.constant 0 : i32
    return %c0_i32, %c0_i32_0 : i32, i32
  }
  func.func @transform_6(%arg0: i32) -> (i32, i32) {
    %c0_i32 = arith.constant 0 : i32
    %c0_i32_0 = arith.constant 0 : i32
    %c0_i32_1 = arith.constant 0 : i32
    return %c0_i32, %c0_i32_0 : i32, i32
  }
  func.func @transform_7(%arg0: i32) -> (i32, i32) {
    %c0_i32 = arith.constant 0 : i32
    %c0_i32_0 = arith.constant 0 : i32
    %c0_i32_1 = arith.constant 0 : i32
    return %c0_i32, %c0_i32_0 : i32, i32
  }
  func.func @transform_8(%arg0: i32) -> (i32, i32) {
    %c0_i32 = arith.constant 0 : i32
    %c0_i32_0 = arith.constant 0 : i32
    %c0_i32_1 = arith.constant 0 : i32
    return %c0_i32, %c0_i32_0 : i32, i32
  }
  func.func @transform_9(%arg0: i32) -> (i32, i32) {
    %c0_i32 = arith.constant 0 : i32
    %c0_i32_0 = arith.constant 0 : i32
    %c0_i32_1 = arith.constant 0 : i32
    return %c0_i32, %c0_i32_0 : i32, i32
  }
  func.func @transform_10(%arg0: i32) -> (i32, i32) {
    %c0_i32 = arith.constant 0 : i32
    %c0_i32_0 = arith.constant 0 : i32
    %c0_i32_1 = arith.constant 0 : i32
    return %c0_i32, %c0_i32_0 : i32, i32
  }
  func.func @transform_11(%arg0: i32) -> (i32, i32) {
    %c0_i32 = arith.constant 0 : i32
    %c0_i32_0 = arith.constant 0 : i32
    return %arg0, %c0_i32 : i32, i32
  }
}

</mosaic_0001>

<bundles_post_ra>
// kernel: tpu_custom_call.1
= control target key start
LH: loop header
LB: loop body
LE: loop exit
PB: predicated region body
PF: predicated region fallthrough
CT: control target
= control target key end

     0   :  { %s3201_s0 = inlined_call_operand.hbm [shape: f32[16,32], index: 0, kind: input, shape index: {}]   ;;  %s3202_s1 = inlined_call_operand.hbm [shape: bf16[32,256], index: 1, kind: input, shape index: {}]   ;;  %s3203_s2 = inlined_call_operand.vmem [shape: bf16[1,256], index: 2, kind: input, shape index: {}]   ;;  %s3204_s3 = inlined_call_operand.hbm [shape: bf16[256,512], index: 3, kind: input, shape index: {}]   ;;  %s3205_s4 = inlined_call_operand.vmem [shape: bf16[1,512], index: 4, kind: input, shape index: {}]   ;;  %s3206_s5 = inlined_call_operand.hbm [shape: bf16[512,256], index: 5, kind: input, shape index: {}]   ;;  %s3207_s6 = inlined_call_operand.vmem [shape: bf16[1,256], index: 6, kind: input, shape index: {}]   ;;  %s3208_s7 = inlined_call_operand.hbm [shape: bf16[256,128], index: 7, kind: input, shape index: {}]   ;;  %s3209_s8 = inlined_call_operand.vmem [shape: bf16[1,128], index: 8, kind: input, shape index: {}]   ;;  %s3210_s9 = inlined_call_operand.hbm [shape: bf16[128,128], index: 9, kind: input, shape index: {}]   ;;  %s3211_s10 = inlined_call_operand.vmem [shape: f32[1,128], index: 10, kind: input, shape index: {}]   ;;  %s3212_s11 = inlined_call_operand.hbm [shape: f32[16,128], index: 11, kind: output, shape index: {}]  }
   0x1   :  { %3217 = sst [smem:[#allocation20_spill]] %s3202_s1 }
   0x2   :  { %3218 = sst [smem:[#allocation21_spill]] %s3204_s3 }
   0x3   :  { %3219 = sst [smem:[#allocation22_spill]] %s3206_s5 }
   0x4   :  { %3220 = sst [smem:[#allocation23_spill]] %s3208_s7 }
   0x5   :  { %3221 = sst [smem:[#allocation24_spill]] %s3210_s9 }
   0x6   :  { %16 = vsyncpa [#allocation3], 0 }
   0x7   :  { %18 = vsyncpa [#allocation3 + $0x1], 0 }
   0x8   :  { %19 = vsyncpa [#allocation6], 0 }
   0x9   :  { %20 = vsyncpa [#allocation9], 0 }
   0xa   :  { %21 = vsyncpa [#allocation12], 0 }
   0xb   :  { %22 = vsyncpa [#allocation4], 0 }
   0xc   :  { %24 = vsyncpa [#allocation4 + $0x1], 0  ;;  %s2945_s17 = smov 0   ;;  %s2947_s18 = smov 0  }
   0xd   :  { %s2949_s19 = smov 0   ;;  %s2951_s20 = smov 0  }
   0xe LB: > { %s2868_s21 = smov [#allocation5]   ;;  %s2966_s23 = sadd.s32 4294967295, %s2866_s20   ;;  %s2866_s20 = sphi %s2951_s20, %s3250_s20   ;;  %s2862_s19 = sphi %s2949_s19, %s3249_s19   ;;  %s2858_s18 = sphi %s2947_s18, %s3248_s18   ;;  %s2854_s17 = sphi %s2945_s17, %s3247_s17  }
   0xf   : > { %s309_s22 = sshll.u32 %s2868_s21, 4  ;;  %p2066_p0 = scmp.ge.s32.totalorder %s2866_s20, 1  ;;  %s310_s22 = int_to_ptr.vmem [resolvable:$true] %s309_s22 }
  0x10   : > { %p3213_p1 = scmp.eq.s32.totalorder %s2966_s23, 0  ;;  %p297_p2 = scmp.lt.s32.totalorder %s2866_s20, 3 }
  0x11   : > { %s2869_s25 = smov [#allocation8]   ;;  %s2870_s28 = smov [#allocation7]  }
  0x12   : > { %p2971_p3 = pnand %p2066_p0, %p297_p2  ;;  %s341_s26 = sshll.u32 %s2869_s25, 4  ;;  %s2984_s26 = int_to_ptr.vmem [resolvable:$true] %s341_s26 }
  0x13   : > { %s325_s29 = sshll.u32 %s2870_s28, 4  ;;  %s2643_s12 = scalar_lea.vmem %s310_s22, 512  ;;  %s2986_s29 = int_to_ptr.vmem [resolvable:$true] %s325_s29 }
  0x14   : > { %s3222_s24 = scalar_select %p2971_p3, 1, 0 }
  0x15   : > { %p2323_p5 = pneg %p2971_p3  ;;  %p2644_p8 = scmp.ne.s32.totalorder %s310_s22, %s2643_s12 }
  0x16   : > { %p2651_p11 = scmp.lt.s32.totalorder %s310_s22, %s310_s22  ;;  %p2652_p12 = scmp.lt.s32.totalorder %s2643_s12, %s2643_s12 }
  0x17   : > { %p2980_p6 = pnand %p2323_p5, %p3213_p1 }
  0x18   : > { %p2653_p13 = por %p2652_p12, %p2651_p11 }
  0x19   : > { %p2990_p7 = pneg %p2980_p6 }
  0x1b   : > { %p2646_p9 = pnand %p2644_p8, %p2990_p7 }
  0x1d   : > { %p2647_p10 = pneg %p2646_p9 }
  0x1f   : > { %p2654_p0 = pnand %p2653_p13, %p2647_p10 }
  0x21   : > { %2657 = shalt.err (!%p2654_p0)
}
  0x22   : > { %s2871_s13 = smov 128   ;;  %s2872_s14 = smov 8  }
  0x23   : > { %s3225_s1 = sld [smem:[#allocation20_spill]]  ;;  %s2669_s21 = scalar_lea.vmem %s2984_s26, 8192 }
  0x24   : > { %p2670_p2 = scmp.ne.s32.totalorder %s2984_s26, %s2669_s21  ;;  %p2677_p9 = scmp.lt.s32.totalorder %s2984_s26, %s2984_s26 }
  0x25   : > { %p2678_p10 = scmp.lt.s32.totalorder %s2669_s21, %s2669_s21 }
  0x26   : > { %p2672_p5 = pnand %p2670_p2, %p2990_p7 }
  0x27   : > { %p2679_p11 = por %p2678_p10, %p2677_p9 }
  0x28   : > { %p2673_p8 = pneg %p2672_p5 }
  0x29   : > { %2326 = dma.hbm_to_vmem [thread:$0]  (!%p2980_p6), %s3225_s1, 512, %s310_s22, [#allocation6], %s2871_s13, %s2871_s13, %s2872_s14  }
  0x2a   : > { %p2680_p12 = pnand %p2679_p11, %p2673_p8 }
  0x2c   : > { %2683 = shalt.err (!%p2680_p12)
}
  0x2d   : > { %s3226_s5 = sld [smem:[#allocation22_spill]]  ;;  %s2695_s22 = scalar_lea.vmem %s2986_s29, 8192 }
  0x2e   : > { %p2696_p13 = scmp.ne.s32.totalorder %s2986_s29, %s2695_s22  ;;  %p2703_p5 = scmp.lt.s32.totalorder %s2986_s29, %s2986_s29 }
  0x2f   : > { %p2704_p8 = scmp.lt.s32.totalorder %s2695_s22, %s2695_s22 }
  0x30   : > { %p2698_p0 = pnand %p2696_p13, %p2990_p7 }
  0x31   : > { %p2705_p9 = por %p2704_p8, %p2703_p5 }
  0x32   : > { %p2699_p2 = pneg %p2698_p0 }
  0x33   : > { %2332 = dma.hbm_to_vmem [thread:$0]  (!%p2980_p6), %s3226_s5, 8192, %s2984_s26, [#allocation9], %s2871_s13, %s2871_s13, %s2872_s14  }
  0x34   : > { %p2706_p10 = pnand %p2705_p9, %p2699_p2 }
  0x36   : > { %2709 = shalt.err (!%p2706_p10)
}
  0x37   : > { %s2873_s12 = smov 256   ;;  %s2874_s15 = smov 16  }
  0x38   : > { %s3227_s3 = sld [smem:[#allocation21_spill]]  ;;  %s2875_s26 = smov [#allocation10]  }
  0x39   : > { %s357_s13 = sshll.u32 %s2875_s26, 4  ;;  %s358_s13 = int_to_ptr.vmem [resolvable:$true] %s357_s13 }
  0x3a   : > { %s2721_s14 = scalar_lea.vmem %s358_s13, 2048  ;;  %p2729_p0 = scmp.lt.s32.totalorder %s358_s13, %s358_s13 }
  0x3b   : > { %p2722_p11 = scmp.ne.s32.totalorder %s358_s13, %s2721_s14  ;;  %p2730_p2 = scmp.lt.s32.totalorder %s2721_s14, %s2721_s14 }
  0x3d   : > { %p2724_p12 = pnand %p2722_p11, %p2990_p7  ;;  %p2731_p5 = por %p2730_p2, %p2729_p0 }
  0x3e   : > { %2329 = dma.hbm_to_vmem [thread:$0]  (!%p2980_p6), %s3227_s3, 8192, %s2986_s29, [#allocation6], %s2873_s12, %s2873_s12, %s2874_s15  }
  0x3f   : > { %p2725_p13 = pneg %p2724_p12 }
  0x41   : > { %p2732_p8 = pnand %p2731_p5, %p2725_p13 }
  0x43   : > { %2735 = shalt.err (!%p2732_p8)
}
  0x44   : > { %s2876_s25 = smov 64   ;;  %s2877_s28 = smov 4  }
  0x45   : > { %s3228_s7 = sld [smem:[#allocation23_spill]]  ;;  %s2878_s12 = smov [#allocation11]  }
  0x46   : > { %s373_s15 = sshll.u32 %s2878_s12, 4  ;;  %s374_s15 = int_to_ptr.vmem [resolvable:$true] %s373_s15 }
  0x47   : > { %s2747_s16 = scalar_lea.vmem %s374_s15, 1024  ;;  %p2755_p12 = scmp.lt.s32.totalorder %s374_s15, %s374_s15 }
  0x48   : > { %p2748_p9 = scmp.ne.s32.totalorder %s374_s15, %s2747_s16  ;;  %p2756_p13 = scmp.lt.s32.totalorder %s2747_s16, %s2747_s16 }
  0x4a   : > { %p2750_p10 = pnand %p2748_p9, %p2990_p7  ;;  %p2757_p0 = por %p2756_p13, %p2755_p12 }
  0x4b   : > { %2335 = dma.hbm_to_vmem [thread:$0]  (!%p2980_p6), %s3228_s7, 2048, %s358_s13, [#allocation9], %s2876_s25, %s2876_s25, %s2877_s28  }
  0x4c   : > { %p2751_p11 = pneg %p2750_p10 }
  0x4e   : > { %p2758_p2 = pnand %p2757_p0, %p2751_p11 }
  0x50   : > { %2761 = shalt.err (!%p2758_p2)
}
  0x51   : > { %s3229_s9 = sld [smem:[#allocation24_spill]]  ;;  %s2065_s30 = sadd.s32 4294967294, %s2866_s20  }
  0x52   : > { %s3041_s27 = sadd.s32 1, %s2866_s20   ;;  %s37_s13 = sadd.s32 1, %s2862_s19 }
  0x53   : > { %s34_s14 = ssub.s32 %s2866_s20, %s3041_s27  ;;  %p44_p7 = scmp.ne.s32.totalorder %s2862_s19, %s2858_s18 }
  0x54   : > { %p35_p5 = scmp.eq.s32.totalorder %s34_s14, 0  ;;  %p45_p8 = scmp.eq.s32.totalorder %s2866_s20, 0 }
  0x55   : > { %p50_p9 = scmp.ne.s32.totalorder %s2858_s18, %s2854_s17  ;;  %p284_p10 = scmp.eq.s32.totalorder %s2966_s23, 1 }
  0x56   : > { %s3053_s22 = scalar_select %p35_p5, %s2862_s19, %s37_s13  }
  0x57   : > { %2338 = dma.hbm_to_vmem [thread:$0]  (!%p2980_p6), %s3229_s9, 1024, %s374_s15, [#allocation12], %s2876_s25, %s2876_s25, %s2877_s28  }
  0x58   : > { %3230 = sst [smem:[#allocation19_spill]] %s3053_s22  ;;  %p46_p11 = por %p45_p8, %p44_p7 }
  0x59   : > { %p3057_p12 = por %p3213_p1, %p50_p9  ;;  %p3061_p6 = por %p284_p10, %p44_p7 }
  0x5a   : > { %p290_p13 = scmp.eq.s32.totalorder %s2065_s30, 1  ;;  %p2352_p0 = scmp.lt.s32.totalorder %s2866_s20, 2 }
  0x5b   : > { %s3231_s29 = scalar_select %p3057_p12, 1, 0 }
  0x5c   : > { %s3232_s25 = scalar_select %p3061_p6, 1, 0 }
  0x5d   : > { %s390_s28 = sand.u32 1, %s2862_s19   ;;  %p3067_p2 = por %p290_p13, %p50_p9 }
  0x5e   : > { %s2073_s15 = sshll.u32 %s390_s28, 3  ;;  %s2074_s16 = sshll.u32 %s2866_s20, 7 }
  0x5f   : > { %s3233_s12 = scalar_select %p3067_p2, 1, 0 }
  0x60   : > { %s3075_s13 = scalar_lea.hbm %s3201_s0, %s2074_s16  ;;  %s394_s14 = scalar_lea.vmem [#allocation2], %s2073_s15 }
  0x61   : > { %s401_s1 = sshll.u32 %s394_s14, 4  ;;  %p3077_p7 = pnand %p2352_p0, %p46_p11  ;;  %s402_s1 = int_to_ptr.vmem [resolvable:$true] %s401_s1 }
  0x62   : > { %s391_s3 = scalar_lea.sflag [#allocation3], %s390_s28  ;;  %s2762_s5 = scalar_lea.hbm %s3075_s13, 128 }
  0x63   : > { %p2763_p5 = scmp.ne.s32.totalorder %s3075_s13, %s2762_s5  ;;  %p2764_p8 = pneg %p3077_p7 }
  0x64   : > { %s2767_s26 = scalar_lea.hbm %s3201_s0, 256  ;;  %p2768_p11 = scmp.lt.s32.totalorder %s3075_s13, %s3201_s0 }
  0x65   : > { %p2765_p9 = pnand %p2764_p8, %p2763_p5  ;;  %p2769_p13 = scmp.lt.s32.totalorder %s2767_s26, %s2762_s5 }
  0x67   : > { %p2766_p10 = pneg %p2765_p9  ;;  %p2770_p0 = por %p2769_p13, %p2768_p11 }
  0x69   : > { %p2771_p4 = pnand %p2770_p0, %p2766_p10 }
  0x6b   : > { %2774 = shalt.err (!%p2771_p4)
}
  0x6c   : > { %s2775_s14 = scalar_lea.vmem %s402_s1, 128  ;;  %s2879_s28 = smov [#allocation2]  }
  0x6d   : > { %p2776_p1 = scmp.ne.s32.totalorder %s402_s1, %s2775_s14  ;;  %s2780_s9 = sshll.u32 %s2879_s28, 4  ;;  %s2781_s9 = int_to_ptr.vmem [resolvable:$false] %s2780_s9 }
  0x6e   : > { %s2782_s22 = scalar_lea.vmem %s2781_s9, 256  ;;  %p2783_p5 = scmp.lt.s32.totalorder %s402_s1, %s2781_s9 }
  0x6f   : > { %p2778_p2 = pnand %p2776_p1, %p2764_p8  ;;  %p2784_p9 = scmp.lt.s32.totalorder %s2782_s22, %s2775_s14 }
  0x71   : > { %p2779_p6 = pneg %p2778_p2  ;;  %p2785_p12 = por %p2784_p9, %p2783_p5 }
  0x73   : > { %p2786_p3 = pnand %p2785_p12, %p2779_p6 }
  0x75   : > { %2789 = shalt.err (!%p2786_p3)
}
  0x76   : > { %2342 = dma.hbm_to_vmem [thread:$0]  (!%p3077_p7), %s3075_s13, 128, %s402_s1, %s391_s3  }
  0x77   : > { %p3235_p10 = scmp.ne.s32.totalorder %s3222_s24, 0 }
  0x78   : > { %s3098_s5 = sand.u32 (!%p3235_p10), 1, %s2858_s18   ;;  %p3236_p1 = scmp.ne.s32.totalorder (!%p3235_p10), %s3231_s29, 0 }
  0x79   : > { %410 = sbr.rel (%p3235_p10) target bundleno = 1474 (0x5c2), region = 64  ;;  %s2076_s7 = sshll.u32 (!%p3235_p10), %s3098_s5, 3 }
  0x7a   : > { %s413_s9 = scalar_lea.sflag (!%p3235_p10), [#allocation3], %s3098_s5  ;;  %s416_s22 = scalar_lea.vmem (!%p3235_p10), [#allocation2], %s2076_s7 }
  0x7e   : > { %2833 = dma.done.wait (%p3236_p1), %s413_s9, 128  }
  0x7f   : > { %2835 = vsyncadd (%p3236_p1), %s413_s9, 4294967168  ;;  %p3237_p3 = scmp.eq.s32.totalorder %s2966_s23, 0 }
  0x81   : > { %2837 = dma.done.wait (%p3237_p3), [#allocation6], 8704   ;;  %p3238_p4 = pmov %p3237_p3 }
  0x82   : > { %p3239_p12 = pmov %p3237_p3 }
  0x83   : > { %2839 = vsyncadd (%p3238_p4), [#allocation6], 4294958592 }
  0x84   : > { %2841 = dma.done.wait (%p3239_p12), [#allocation9], 10240   ;;  %p3240_p6 = pmov %p3237_p3 }
  0x85   : > { %p3241_p2 = pmov %p3237_p3 }
  0x86   : > { %2843 = vsyncadd (%p3240_p6), [#allocation9], 4294957056 }
  0x87   : > { %2845 = dma.done.wait (%p3241_p2), [#allocation12], 1024   ;;  %p3242_p7 = pmov %p3241_p2 }
  0x88   : > { %v2880_v0 = vmov 0   ;;  %v2406_v1 = vld [vmem:[#allocation5 + $0x14] ss:$8 sps:$4 sm:$0xff]   ;;  %v2408_v2 = vld [vmem:[#allocation5 + $0x10] ss:$8 sps:$4 sm:$0xff]   ;;  %vm502_vm0 = vcmask 261120  }
  0x89   : > { %2847 = vsyncadd (%p3242_p7), [#allocation12], 4294966272  ;;  %538 = vmatprep.mubr.bf16.mxu0 %v2880_v0  ;;  %518 = vmatprep.subr.bf16.mxu0 %v2406_v1  ;;  %v2409_v3 = vld [vmem:[#allocation5 + $0x4] ss:$8 sps:$4 sm:$0xff]   ;;  %v2411_v4 = vld [vmem:[#allocation5] ss:$8 sps:$4 sm:$0xff]  }
  0x8a   : > { %v476_v5 = vld [vmem:[%s416_s22] sm:$0xff]  ;;  %519 = vmatpush1.bf16.msra.mxu0 %v2408_v2  ;;  %vm2883_vm1 = vmmov 0   ;;  %s2245_s14 = sshll.u32 %s2966_s23, 7  ;;  %s474_s28 = scalar_lea.vmem [#allocation13], %s2076_s7 }
  0x8b   : > { %v2412_v6 = vld [vmem:[#allocation7 + $0xe4] ss:$16 sps:$4 sm:$0xff]   ;;  %520 = vmatprep.subr.bf16.mxu0 %v2409_v3  ;;  %v2416_v7 = vld [vmem:[#allocation7 + $0xec] ss:$16 sps:$4 sm:$0xff]   ;;  %v2417_v8 = vld [vmem:[#allocation7 + $0xe0] ss:$16 sps:$4 sm:$0xff]   ;;  %v477_v9 = vpack.c.bf16 %v476_v5, %v476_v5  ;;  %s1945_s3 = scalar_lea.hbm %s3212_s11, %s2245_s14 }
  0x8c   : > { %975 = vmatprep.subr.bf16.mxu1 %v2412_v6  ;;  %v2418_v10 = vld [vmem:[#allocation7 + $0xc4] ss:$16 sps:$4 sm:$0xff]   ;;  %v2414_v11 = vld [vmem:[#allocation7 + $0xe8] ss:$16 sps:$4 sm:$0xff]   ;;  %v2422_v12 = vld [vmem:[#allocation7 + $0xcc] ss:$16 sps:$4 sm:$0xff]  }
  0x8d   : > { %976 = vmatpush1.bf16.msra.mxu1 %v2417_v8  ;;  %v2423_v13 = vld [vmem:[#allocation7 + $0xc0] ss:$16 sps:$4 sm:$0xff]   ;;  %v2424_v14 = vld [vmem:[#allocation7 + $0xa4] ss:$16 sps:$4 sm:$0xff]   ;;  %v2420_v15 = vld [vmem:[#allocation7 + $0xc8] ss:$16 sps:$4 sm:$0xff]  }
  0x8e   : > { %521 = vmatpush1.bf16.msra.mxu0 %v2411_v4  ;;  %977 = vmatprep.subr.bf16.mxu1 %v2418_v10  ;;  %v2428_v16 = vld [vmem:[#allocation7 + $0xac] ss:$16 sps:$4 sm:$0xff]   ;;  %v2429_v17 = vld [vmem:[#allocation7 + $0xa0] ss:$16 sps:$4 sm:$0xff]   ;;  %v2430_v18 = vld [vmem:[#allocation7 + $0x84] ss:$16 sps:$4 sm:$0xff]  }
  0x8f   : > { %1016 = vmatprep.subr.bf16.mxu0 %v2416_v7  ;;  %v2426_v19 = vld [vmem:[#allocation7 + $0xa8] ss:$16 sps:$4 sm:$0xff]   ;;  %v2434_v20 = vld [vmem:[#allocation7 + $0x8c] ss:$16 sps:$4 sm:$0xff]   ;;  %v2435_v21 = vld [vmem:[#allocation7 + $0x80] ss:$16 sps:$4 sm:$0xff]  }
  0x90   : > { %v2436_v22 = vld [vmem:[#allocation7 + $0x64] ss:$16 sps:$4 sm:$0xff]   ;;  %v2432_v23 = vld [vmem:[#allocation7 + $0x88] ss:$16 sps:$4 sm:$0xff]   ;;  %v2440_v24 = vld [vmem:[#allocation7 + $0x6c] ss:$16 sps:$4 sm:$0xff]  }
  0x91   : > { %2087 = vmatmul.mubr.msk.bf16.vlgmr.msra.gmra.mxu0 %vm502_vm0, %v477_v9  ;;  %978 = vmatpush1.bf16.msra.mxu1 %v2423_v13  ;;  %v2441_v25 = vld [vmem:[#allocation7 + $0x60] ss:$16 sps:$4 sm:$0xff]   ;;  %v2442_v26 = vld [vmem:[#allocation7 + $0x44] ss:$16 sps:$4 sm:$0xff]   ;;  %v2438_v27 = vld [vmem:[#allocation7 + $0x68] ss:$16 sps:$4 sm:$0xff]  }
  0x92   : > { %1017 = vmatpush1.bf16.msra.mxu0 %v2414_v11  ;;  %979 = vmatprep.subr.bf16.mxu1 %v2424_v14  ;;  %v2446_v28 = vld [vmem:[#allocation7 + $0x4c] ss:$16 sps:$4 sm:$0xff]   ;;  %v2447_v29 = vld [vmem:[#allocation7 + $0x40] ss:$16 sps:$4 sm:$0xff]   ;;  %v2448_v30 = vld [vmem:[#allocation7 + $0x24] ss:$16 sps:$4 sm:$0xff]  }
  0x93   : > { %1018 = vmatprep.subr.bf16.mxu0 %v2422_v12  ;;  %v2444_v31 = vld [vmem:[#allocation7 + $0x48] ss:$16 sps:$4 sm:$0xff]   ;;  %v2452_v32 = vld [vmem:[#allocation7 + $0x2c] ss:$16 sps:$4 sm:$0xff]   ;;  %v2453_v33 = vld [vmem:[#allocation7 + $0x20] ss:$16 sps:$4 sm:$0xff]   ;;  %v562_v12 = vlaneseq }
  0x94   : > { %v2454_v34 = vld [vmem:[#allocation7 + $0x4] ss:$16 sps:$4 sm:$0xff]   ;;  %v2450_v35 = vld [vmem:[#allocation7 + $0x28] ss:$16 sps:$4 sm:$0xff]   ;;  %v2458_v36 = vld [vmem:[#allocation7 + $0xc] ss:$16 sps:$4 sm:$0xff]  }
  0x95   : > { %980 = vmatpush1.bf16.msra.mxu1 %v2429_v17  ;;  %v2459_v37 = vld [vmem:[#allocation7] ss:$16 sps:$4 sm:$0xff]   ;;  %v2460_v38 = vld [vmem:[#allocation7 + $0x1e4] ss:$16 sps:$4 sm:$0xff]   ;;  %v2456_v39 = vld [vmem:[#allocation7 + $0x8] ss:$16 sps:$4 sm:$0xff]  }
  0x96   : > { %1019 = vmatpush1.bf16.msra.mxu0 %v2420_v15  ;;  %981 = vmatprep.subr.bf16.mxu1 %v2430_v18  ;;  %v2464_v40 = vld [vmem:[#allocation7 + $0x1ec] ss:$16 sps:$4 sm:$0xff]   ;;  %v2465_v41 = vld [vmem:[#allocation7 + $0x1e0] ss:$16 sps:$4 sm:$0xff]   ;;  %v2466_v42 = vld [vmem:[#allocation7 + $0x1c4] ss:$16 sps:$4 sm:$0xff]  }
  0x97   : > { %1020 = vmatprep.subr.bf16.mxu0 %v2428_v16  ;;  %v2462_v43 = vld [vmem:[#allocation7 + $0x1e8] ss:$16 sps:$4 sm:$0xff]   ;;  %v2470_v44 = vld [vmem:[#allocation7 + $0x1cc] ss:$16 sps:$4 sm:$0xff]   ;;  %v2471_v45 = vld [vmem:[#allocation7 + $0x1c0] ss:$16 sps:$4 sm:$0xff]  }
  0x98   : > { %v2472_v46 = vld [vmem:[#allocation7 + $0x1a4] ss:$16 sps:$4 sm:$0xff]   ;;  %v2468_v47 = vld [vmem:[#allocation7 + $0x1c8] ss:$16 sps:$4 sm:$0xff]   ;;  %v2477_v48 = vld [vmem:[#allocation7 + $0x1a0] ss:$16 sps:$4 sm:$0xff]  }
  0x99   : > { %982 = vmatpush1.bf16.msra.mxu1 %v2435_v21  ;;  %v2476_v49 = vld [vmem:[#allocation7 + $0x1ac] ss:$16 sps:$4 sm:$0xff]   ;;  %v2478_v50 = vld [vmem:[#allocation7 + $0x184] ss:$16 sps:$4 sm:$0xff]   ;;  %v2474_v51 = vld [vmem:[#allocation7 + $0x1a8] ss:$16 sps:$4 sm:$0xff]  }
  0x9a   : > { %1021 = vmatpush1.bf16.msra.mxu0 %v2426_v19  ;;  %983 = vmatprep.subr.bf16.mxu1 %v2436_v22  ;;  %v2483_v52 = vld [vmem:[#allocation7 + $0x180] ss:$16 sps:$4 sm:$0xff]   ;;  %v2482_v53 = vld [vmem:[#allocation7 + $0x18c] ss:$16 sps:$4 sm:$0xff]   ;;  %v2484_v54 = vld [vmem:[#allocation7 + $0x164] ss:$16 sps:$4 sm:$0xff]  }
  0x9b   : > { %1022 = vmatprep.subr.bf16.mxu0 %v2434_v20  ;;  %v2480_v55 = vld [vmem:[#allocation7 + $0x188] ss:$16 sps:$4 sm:$0xff]   ;;  %v2489_v56 = vld [vmem:[#allocation7 + $0x160] ss:$16 sps:$4 sm:$0xff]   ;;  %v2488_v57 = vld [vmem:[#allocation7 + $0x16c] ss:$16 sps:$4 sm:$0xff]  }
  0x9c   : > { %v2490_v58 = vld [vmem:[#allocation7 + $0x144] ss:$16 sps:$4 sm:$0xff]   ;;  %v2486_v59 = vld [vmem:[#allocation7 + $0x168] ss:$16 sps:$4 sm:$0xff]   ;;  %v2495_v60 = vld [vmem:[#allocation7 + $0x140] ss:$16 sps:$4 sm:$0xff]  }
  0x9d   : > { %984 = vmatpush1.bf16.msra.mxu1 %v2441_v25  ;;  %v2494_v61 = vld [vmem:[#allocation7 + $0x14c] ss:$16 sps:$4 sm:$0xff]   ;;  %v2492_v62 = vld [vmem:[#allocation7 + $0x148] ss:$16 sps:$4 sm:$0xff]   ;;  %v2496_v63 = vld [vmem:[#allocation7 + $0x124] ss:$16 sps:$4 sm:$0xff]  }
  0x9e   : > { %1023 = vmatpush1.bf16.msra.mxu0 %v2432_v23  ;;  %985 = vmatprep.subr.bf16.mxu1 %v2442_v26  ;;  %v2500_v1 = vld [vmem:[#allocation7 + $0x12c] ss:$16 sps:$4 sm:$0xff]   ;;  %v2498_v2 = vld [vmem:[#allocation7 + $0x128] ss:$16 sps:$4 sm:$0xff]   ;;  %v2501_v3 = vld [vmem:[#allocation7 + $0x120] ss:$16 sps:$4 sm:$0xff]  }
  0x9f   : > { %1024 = vmatprep.subr.bf16.mxu0 %v2440_v24  ;;  %v2502_v4 = vld [vmem:[#allocation7 + $0x104] ss:$16 sps:$4 sm:$0xff]   ;;  %v2506_v5 = vld [vmem:[#allocation7 + $0x10c] ss:$16 sps:$4 sm:$0xff]   ;;  %v2504_v6 = vld [vmem:[#allocation7 + $0x108] ss:$16 sps:$4 sm:$0xff]  }
  0xa0   : > { %v2507_v7 = vld [vmem:[#allocation7 + $0x100] ss:$16 sps:$4 sm:$0xff]   ;;  %v2510_v8 = vld [vmem:[#allocation8 + $0x74] ss:$8 sps:$4 sm:$0xff]   ;;  %v2881_v10 = vmov 1966171168  }
  0xa1   : > { %986 = vmatpush1.bf16.msra.mxu1 %v2447_v29  ;;  %v2513_v9 = vld [vmem:[#allocation8 + $0x174] ss:$8 sps:$4 sm:$0xff]   ;;  %v560_v11 = vunpack.c.l.s4 %v2881_v10  ;;  %v563_v14 = vshrl.u32 %v562_v12, 7  ;;  %v2568_v12 = vld [vmem:[#allocation8 + $0xd0] ss:$8 sps:$4 sm:$0xff]   ;;  %s1947_s9 = sshll.u32 %s474_s28, 4  ;;  %s1948_s9 = int_to_ptr.vmem [resolvable:$true] %s1947_s9 }
  0xa2   : > { %1025 = vmatpush1.bf16.msra.mxu0 %v2438_v27  ;;  %987 = vmatprep.subr.bf16.mxu1 %v2448_v30  ;;  %v2088_v15 = vld.sshfl [vmem:[%s3203_s2] sm:$0x11 pattern:$0x75316420]  ;;  %v2570_v10 = vld [vmem:[#allocation8 + $0xd4] ss:$8 sps:$4 sm:$0xff]  }
  0xa3   : > { %1026 = vmatprep.subr.bf16.mxu0 %v2446_v28  ;;  %v561_v13 = vunpack.c.0.s8 %v560_v11  ;;  %v558_v17 = vcombine.high %v2088_v15, %v2088_v15  ;;  %v3128_v21 = vsub.s32 0, %v563_v14  ;;  %v2573_v11 = vld [vmem:[#allocation8 + $0x1d4] ss:$8 sps:$4 sm:$0xff]   ;;  %s1934_s24 = scalar_lea.sflag [#allocation4], %s3098_s5  ;;  %s2790_s29 = scalar_lea.vmem %s1948_s9, 128 }
  0xa4   : > { %p2791_p8 = scmp.ne.s32.totalorder %s1948_s9, %s2790_s29  ;;  %p3243_p11 = scmp.ne.s32.totalorder %s3232_s25, 0 }
  0xa5   : > { %988 = vmatpush1.bf16.msra.mxu1 %v2453_v33  ;;  %v3124_v16 = vsub.s32 %v561_v13, %v563_v14  ;;  %v2571_v13 = vld [vmem:[#allocation8 + $0x1d0] ss:$8 sps:$4 sm:$0xff]   ;;  %v2576_v14 = vld [vmem:[#allocation8 + $0xc4] ss:$8 sps:$4 sm:$0xff]   ;;  %s2884_s13 = smov [#allocation13]  }
  0xa6   : > { %1027 = vmatpush1.bf16.msra.mxu0 %v2444_v31  ;;  %989 = vmatprep.subr.bf16.mxu1 %v2454_v34  ;;  %v2508_v34 = vld [vmem:[#allocation8 + $0x70] ss:$8 sps:$4 sm:$0xff]   ;;  %p2792_p13 = pnand %p2791_p8, %p3243_p11  ;;  %s2794_s30 = sshll.u32 %s2884_s13, 4  ;;  %s2795_s30 = int_to_ptr.vmem [resolvable:$false] %s2794_s30 }
  0xa7   : > { %1028 = vmatprep.subr.bf16.mxu0 %v2452_v32  ;;  %v565_v18 = vrot.slane %v2088_v15, %v3124_v16  ;;  %v572_v19 = vrot.slane %v558_v17, %v3124_v16  ;;  %v2579_v15 = vld [vmem:[#allocation8 + $0x1c4] ss:$8 sps:$4 sm:$0xff]   ;;  %v2574_v17 = vld [vmem:[#allocation8 + $0xc0] ss:$8 sps:$4 sm:$0xff]   ;;  %s2796_s23 = scalar_lea.vmem %s2795_s30, 256  ;;  %p2797_p5 = scmp.lt.s32.totalorder %s1948_s9, %s2795_s30 }
  0xa8   : > { %p2793_p0 = pneg %p2792_p13  ;;  %p2798_p9 = scmp.lt.s32.totalorder %s2796_s23, %s2790_s29 }
  0xa9   : > { %990 = vmatpush1.bf16.msra.mxu1 %v2459_v37  ;;  %v574_v20 = vpack.i.b16 %v565_v18, %v565_v18  ;;  %v581_v22 = vpack.i.b16 %v572_v19, %v572_v19  ;;  %v2516_v37 = vld [vmem:[#allocation8 + $0x64] ss:$8 sps:$4 sm:$0xff]   ;;  %v2577_v18 = vld [vmem:[#allocation8 + $0x1c0] ss:$8 sps:$4 sm:$0xff]   ;;  %v2582_v19 = vld [vmem:[#allocation8 + $0xb4] ss:$8 sps:$4 sm:$0xff]  }
  0xaa   : > { %1029 = vmatpush1.bf16.msra.mxu0 %v2450_v35  ;;  %991 = vmatprep.subr.bf16.mxu1 %v2460_v38  ;;  %v2511_v35 = vld [vmem:[#allocation8 + $0x170] ss:$8 sps:$4 sm:$0xff]   ;;  %v2519_v38 = vld [vmem:[#allocation8 + $0x164] ss:$8 sps:$4 sm:$0xff]   ;;  %p2799_p10 = por %p2798_p9, %p2797_p5 }
  0xab   : > { %1030 = vmatprep.subr.bf16.mxu0 %v2458_v36  ;;  %v579_v24 = vrot.slane %v574_v20, %v3128_v21  ;;  %v586_v26 = vrot.slane %v581_v22, %v3128_v21  ;;  %v2585_v20 = vld [vmem:[#allocation8 + $0x1b4] ss:$8 sps:$4 sm:$0xff]   ;;  %v2580_v22 = vld [vmem:[#allocation8 + $0xb0] ss:$8 sps:$4 sm:$0xff]  }
  0xac   : > { %p2800_p1 = pnand %p2799_p10, %p2793_p0 }
  0xad   : > { %992 = vmatpush2.bf16.msra.mxu1 %v2465_v41  ;;  %v2522_v41 = vld [vmem:[#allocation8 + $0x54] ss:$8 sps:$4 sm:$0xff]  }
  0xae   : > { %1031 = vmatpush1.bf16.msra.mxu0 %v2456_v39  ;;  %993 = vmatprep.subr.bf16.mxu1 %v2466_v42  ;;  %v2514_v39 = vld [vmem:[#allocation8 + $0x60] ss:$8 sps:$4 sm:$0xff]   ;;  %v2525_v42 = vld [vmem:[#allocation8 + $0x154] ss:$8 sps:$4 sm:$0xff]  }
  0xaf   : > { %1032 = vmatprep.subr.bf16.mxu0 %v2464_v40  ;;  %v2517_v40 = vld [vmem:[#allocation8 + $0x160] ss:$8 sps:$4 sm:$0xff]  }
  0xb1   : > { %994 = vmatpush2.bf16.msra.mxu1 %v2471_v45  ;;  %v2528_v45 = vld [vmem:[#allocation8 + $0x44] ss:$8 sps:$4 sm:$0xff]  }
  0xb2   : > { %1033 = vmatpush2.bf16.msra.mxu0 %v2462_v43  ;;  %995 = vmatprep.subr.bf16.mxu1 %v2472_v46  ;;  %v2520_v43 = vld [vmem:[#allocation8 + $0x50] ss:$8 sps:$4 sm:$0xff]   ;;  %v2531_v46 = vld [vmem:[#allocation8 + $0x144] ss:$8 sps:$4 sm:$0xff]  }
  0xb3   : > { %1034 = vmatprep.subr.bf16.mxu0 %v2470_v44  ;;  %v2523_v44 = vld [vmem:[#allocation8 + $0x150] ss:$8 sps:$4 sm:$0xff]  }
  0xb5   : > { %996 = vmatpush2.bf16.msra.mxu1 %v2477_v48  ;;  %v2529_v48 = vld [vmem:[#allocation8 + $0x140] ss:$8 sps:$4 sm:$0xff]  }
  0xb6   : > { %1035 = vmatpush2.bf16.msra.mxu0 %v2468_v47  ;;  %997 = vmatprep.subr.bf16.mxu1 %v2478_v50  ;;  %v2526_v47 = vld [vmem:[#allocation8 + $0x40] ss:$8 sps:$4 sm:$0xff]   ;;  %v2537_v50 = vld [vmem:[#allocation8 + $0x134] ss:$8 sps:$4 sm:$0xff]  }
  0xb7   : > { %1036 = vmatprep.subr.bf16.mxu0 %v2476_v49  ;;  %v2534_v49 = vld [vmem:[#allocation8 + $0x34] ss:$8 sps:$4 sm:$0xff]  }
  0xb9   : > { %998 = vmatpush2.bf16.msra.mxu1 %v2483_v52  ;;  %v2535_v52 = vld [vmem:[#allocation8 + $0x130] ss:$8 sps:$4 sm:$0xff]  }
  0xba   : > { %1037 = vmatpush2.bf16.msra.mxu0 %v2474_v51  ;;  %999 = vmatprep.subr.bf16.mxu1 %v2484_v54  ;;  %v2532_v51 = vld [vmem:[#allocation8 + $0x30] ss:$8 sps:$4 sm:$0xff]   ;;  %v2543_v54 = vld [vmem:[#allocation8 + $0x124] ss:$8 sps:$4 sm:$0xff]  }
  0xbb   : > { %1038 = vmatprep.subr.bf16.mxu0 %v2482_v53  ;;  %v2540_v53 = vld [vmem:[#allocation8 + $0x24] ss:$8 sps:$4 sm:$0xff]  }
  0xbd   : > { %1000 = vmatpush2.bf16.msra.mxu1 %v2489_v56  ;;  %v2541_v56 = vld [vmem:[#allocation8 + $0x120] ss:$8 sps:$4 sm:$0xff]  }
  0xbe   : > { %1039 = vmatpush2.bf16.msra.mxu0 %v2480_v55  ;;  %1001 = vmatprep.subr.bf16.mxu1 %v2490_v58  ;;  %v2538_v55 = vld [vmem:[#allocation8 + $0x20] ss:$8 sps:$4 sm:$0xff]   ;;  %v2549_v58 = vld [vmem:[#allocation8 + $0x114] ss:$8 sps:$4 sm:$0xff]  }
  0xbf   : > { %1040 = vmatprep.subr.bf16.mxu0 %v2488_v57  ;;  %v2546_v57 = vld [vmem:[#allocation8 + $0x14] ss:$8 sps:$4 sm:$0xff]  }
  0xc1   : > { %1002 = vmatpush2.bf16.msra.mxu1 %v2495_v60  ;;  %v2547_v60 = vld [vmem:[#allocation8 + $0x110] ss:$8 sps:$4 sm:$0xff]  }
  0xc2   : > { %1041 = vmatpush2.bf16.msra.mxu0 %v2486_v59  ;;  %1003 = vmatprep.subr.bf16.mxu1 %v2496_v63  ;;  %v2544_v59 = vld [vmem:[#allocation8 + $0x10] ss:$8 sps:$4 sm:$0xff]   ;;  %v2550_v63 = vld [vmem:[#allocation8] ss:$8 sps:$4 sm:$0xff]  }
  0xc3   : > { %1042 = vmatprep.subr.bf16.mxu0 %v2494_v61  ;;  %v2552_v61 = vld [vmem:[#allocation8 + $0x4] ss:$8 sps:$4 sm:$0xff]  }
  0xc5   : > { %1004 = vmatpush2.bf16.msra.mxu1 %v2501_v3  ;;  %v2561_v3 = vld [vmem:[#allocation8 + $0x1f4] ss:$8 sps:$4 sm:$0xff]  }
  0xc6   : > { %1043 = vmatpush2.bf16.msra.mxu0 %v2492_v62  ;;  %1005 = vmatprep.subr.bf16.mxu1 %v2502_v4  ;;  %v2555_v62 = vld [vmem:[#allocation8 + $0x104] ss:$8 sps:$4 sm:$0xff]   ;;  %v2556_v4 = vld [vmem:[#allocation8 + $0xf0] ss:$8 sps:$4 sm:$0xff]  }
  0xc7   : > { %1044 = vmatprep.subr.bf16.mxu0 %v2500_v1  ;;  %v2553_v1 = vld [vmem:[#allocation8 + $0x100] ss:$8 sps:$4 sm:$0xff]  }
  0xc9   : > { %1006 = vmatpush2.bf16.msra.mxu1 %v2507_v7  ;;  %v2567_v7 = vld [vmem:[#allocation8 + $0x1e4] ss:$8 sps:$4 sm:$0xff]  }
  0xca   : > { %1045 = vmatpush2.bf16.msra.mxu0 %v2498_v2  ;;  %1507 = vmatprep.subr.bf16.mxu1 %v2510_v8  ;;  %v2558_v2 = vld [vmem:[#allocation8 + $0xf4] ss:$8 sps:$4 sm:$0xff]   ;;  %v2562_v8 = vld [vmem:[#allocation8 + $0xe0] ss:$8 sps:$4 sm:$0xff]  }
  0xcb   : > { %1046 = vmatprep.subr.bf16.mxu0 %v2506_v5  ;;  %v2559_v5 = vld [vmem:[#allocation8 + $0x1f0] ss:$8 sps:$4 sm:$0xff]  }
  0xce   : > { %1047 = vmatpush2.bf16.msra.mxu0 %v2504_v6  ;;  %v2564_v6 = vld [vmem:[#allocation8 + $0xe4] ss:$8 sps:$4 sm:$0xff]  }
  0xcf   : > { %1548 = vmatprep.subr.bf16.mxu0 %v2513_v9  ;;  %v2565_v9 = vld [vmem:[#allocation8 + $0x1e0] ss:$8 sps:$4 sm:$0xff]  }
 0x151   : > { %v540_v23 = vpop.f32.mrf.mxu0 }
 0x152   : > { %v547_v25 = vpack.c.bf16 %v540_v23, %v540_v23  ;;  %v2583_v23 = vld [vmem:[#allocation8 + $0x1b0] ss:$8 sps:$4 sm:$0xff]  }
 0x153   : > { %v542_v27 = vpop.f32.mrf.mxu0 }
 0x154   : > { %v548_v28 = vpack.c.bf16 %v542_v27, %v542_v27  ;;  %v587_v29 = vadd.bf16 %v579_v24, %v547_v25  ;;  %v2588_v24 = vld [vmem:[#allocation8 + $0xa4] ss:$8 sps:$4 sm:$0xff]   ;;  %v2589_v27 = vld [vmem:[#allocation8 + $0x1a0] ss:$8 sps:$4 sm:$0xff]  }
 0x155   : > { %v544_v30 = vpop.f32.mrf.mxu0  ;;  %v2591_v25 = vld [vmem:[#allocation8 + $0x1a4] ss:$8 sps:$4 sm:$0xff]  }
 0x156   : > { %v588_v31 = vadd.bf16 %v586_v26, %v548_v28  ;;  %v589_v36 = vmax.bf16 %v2880_v0, %v587_v29  ;;  %v2586_v26 = vld [vmem:[#allocation8 + $0xa0] ss:$8 sps:$4 sm:$0xff]   ;;  %v2594_v28 = vld [vmem:[#allocation8 + $0x94] ss:$8 sps:$4 sm:$0xff]   ;;  %v2592_v30 = vld [vmem:[#allocation8 + $0x90] ss:$8 sps:$4 sm:$0xff]  }
 0x157   : > { %v545_v32 = vpop.f32.mrf.mxu0  ;;  %v2597_v29 = vld [vmem:[#allocation8 + $0x194] ss:$8 sps:$4 sm:$0xff]  }
 0x158   : > { %v590_v33 = vmax.bf16 %v2880_v0, %v588_v31  ;;  %v2595_v31 = vld [vmem:[#allocation8 + $0x190] ss:$8 sps:$4 sm:$0xff]   ;;  %v2600_v32 = vld [vmem:[#allocation8 + $0x84] ss:$8 sps:$4 sm:$0xff]  }
 0x15a   : > { %1007 = vmatprep.mubr.bf16.mxu1 %v590_v33  ;;  %1048 = vmatprep.mubr.bf16.mxu0 %v590_v33  ;;  %v2603_v33 = vld [vmem:[#allocation8 + $0x184] ss:$8 sps:$4 sm:$0xff]  }
 0x15b   : > { %1008 = vmatmul.mubr.bf16.vlgmr.msra.gmra.mxu1 %v589_v36  ;;  %1049 = vmatmul.mubr.bf16.vlgmr.msra.gmra.mxu0 %v589_v36  ;;  %v2604_v36 = vld [vmem:[#allocation10 + $0x78] sm:$0xff]  }
 0x15c   : > { %1508 = vmatpush1.bf16.msra.mxu1 %v2508_v34  ;;  %1549 = vmatpush1.bf16.msra.mxu0 %v2511_v35  ;;  %v2598_v34 = vld [vmem:[#allocation8 + $0x80] ss:$8 sps:$4 sm:$0xff]  }
 0x15d   : > { %1509 = vmatprep.subr.bf16.mxu1 %v2516_v37  ;;  %1550 = vmatprep.subr.bf16.mxu0 %v2519_v38  ;;  %v2601_v35 = vld [vmem:[#allocation8 + $0x180] ss:$8 sps:$4 sm:$0xff]   ;;  %v2153_v37 = vld.sshfl [vmem:[%s3205_s4] sm:$0x33 pattern:$0x75316420] }
 0x15e   : > { %v1070_v38 = vcombine.high %v2153_v37, %v2153_v37 }
 0x160   : > { %1510 = vmatpush1.bf16.msra.mxu1 %v2514_v39  ;;  %1551 = vmatpush1.bf16.msra.mxu0 %v2517_v40  ;;  %v1077_v39 = vrot.slane %v2153_v37, %v3124_v16  ;;  %v1084_v40 = vrot.slane %v1070_v38, %v3124_v16 }
 0x161   : > { %1511 = vmatprep.subr.bf16.mxu1 %v2522_v41  ;;  %1552 = vmatprep.subr.bf16.mxu0 %v2525_v42 }
 0x162   : > { %v1085_v41 = vcombine.high %v1077_v39, %v1077_v39  ;;  %v1086_v42 = vcombine.high %v1084_v40, %v1084_v40 }
 0x164   : > { %1512 = vmatpush1.bf16.msra.mxu1 %v2520_v43  ;;  %1553 = vmatpush1.bf16.msra.mxu0 %v2523_v44  ;;  %v1088_v43 = vpack.i.b16 %v1077_v39, %v1077_v39  ;;  %v1102_v44 = vpack.i.b16 %v1085_v41, %v1085_v41 }
 0x165   : > { %1513 = vmatprep.subr.bf16.mxu1 %v2528_v45  ;;  %1554 = vmatprep.subr.bf16.mxu0 %v2531_v46  ;;  %v1095_v45 = vpack.i.b16 %v1084_v40, %v1084_v40  ;;  %v1109_v46 = vpack.i.b16 %v1086_v42, %v1086_v42 }
 0x168   : > { %1514 = vmatpush1.bf16.msra.mxu1 %v2526_v47  ;;  %1555 = vmatpush1.bf16.msra.mxu0 %v2529_v48  ;;  %v1093_v48 = vrot.slane %v1088_v43, %v3128_v21 }
 0x169   : > { %1515 = vmatprep.subr.bf16.mxu1 %v2534_v49  ;;  %1556 = vmatprep.subr.bf16.mxu0 %v2537_v50  ;;  %v1107_v50 = vrot.slane %v1102_v44, %v3128_v21 }
 0x16c   : > { %1516 = vmatpush1.bf16.msra.mxu1 %v2532_v51  ;;  %1557 = vmatpush1.bf16.msra.mxu0 %v2535_v52 }
 0x16d   : > { %1517 = vmatprep.subr.bf16.mxu1 %v2540_v53  ;;  %1558 = vmatprep.subr.bf16.mxu0 %v2543_v54  ;;  %v1100_v53 = vrot.slane %v1095_v45, %v3128_v21  ;;  %v1114_v54 = vrot.slane %v1109_v46, %v3128_v21 }
 0x170   : > { %1518 = vmatpush1.bf16.msra.mxu1 %v2538_v55  ;;  %1559 = vmatpush1.bf16.msra.mxu0 %v2541_v56 }
 0x171   : > { %1519 = vmatprep.subr.bf16.mxu1 %v2546_v57  ;;  %1560 = vmatprep.subr.bf16.mxu0 %v2549_v58 }
 0x174   : > { %1520 = vmatpush1.bf16.msra.mxu1 %v2544_v59  ;;  %1561 = vmatpush1.bf16.msra.mxu0 %v2547_v60 }
 0x175   : > { %1521 = vmatprep.subr.bf16.mxu1 %v2552_v61  ;;  %1562 = vmatprep.subr.bf16.mxu0 %v2555_v62 }
 0x178   : > { %1522 = vmatpush1.bf16.msra.mxu1 %v2550_v63  ;;  %1563 = vmatpush1.bf16.msra.mxu0 %v2553_v1 }
 0x179   : > { %1523 = vmatprep.subr.bf16.mxu1 %v2558_v2  ;;  %1564 = vmatprep.subr.bf16.mxu0 %v2561_v3 }
 0x17c   : > { %1524 = vmatpush2.bf16.msra.mxu1 %v2556_v4  ;;  %1565 = vmatpush2.bf16.msra.mxu0 %v2559_v5 }
 0x17d   : > { %1525 = vmatprep.subr.bf16.mxu1 %v2564_v6  ;;  %1566 = vmatprep.subr.bf16.mxu0 %v2567_v7  ;;  %v2605_v6 = vld [vmem:[#allocation10 + $0x38] sm:$0xff]  }
 0x180   : > { %1526 = vmatpush2.bf16.msra.mxu1 %v2562_v8  ;;  %1567 = vmatpush2.bf16.msra.mxu0 %v2565_v9  ;;  %v2606_v9 = vld [vmem:[#allocation10 + $0x70] sm:$0xff]  }
 0x181   : > { %1527 = vmatprep.subr.bf16.mxu1 %v2570_v10  ;;  %1568 = vmatprep.subr.bf16.mxu0 %v2573_v11  ;;  %v2607_v10 = vld [vmem:[#allocation10 + $0x30] sm:$0xff]   ;;  %v2608_v11 = vld [vmem:[#allocation10 + $0x68] sm:$0xff]  }
 0x184   : > { %1528 = vmatpush2.bf16.msra.mxu1 %v2568_v12  ;;  %1569 = vmatpush2.bf16.msra.mxu0 %v2571_v13  ;;  %v2609_v12 = vld [vmem:[#allocation10 + $0x28] sm:$0xff]   ;;  %v2610_v13 = vld [vmem:[#allocation10 + $0x60] sm:$0xff]  }
 0x185   : > { %1529 = vmatprep.subr.bf16.mxu1 %v2576_v14  ;;  %1570 = vmatprep.subr.bf16.mxu0 %v2579_v15  ;;  %v2611_v14 = vld [vmem:[#allocation10 + $0x20] sm:$0xff]   ;;  %v2612_v15 = vld [vmem:[#allocation10 + $0x58] sm:$0xff]  }
 0x188   : > { %1530 = vmatpush2.bf16.msra.mxu1 %v2574_v17  ;;  %1571 = vmatpush2.bf16.msra.mxu0 %v2577_v18  ;;  %v2613_v17 = vld [vmem:[#allocation10 + $0x18] sm:$0xff]   ;;  %v2614_v18 = vld [vmem:[#allocation10 + $0x50] sm:$0xff]  }
 0x189   : > { %1531 = vmatprep.subr.bf16.mxu1 %v2582_v19  ;;  %1572 = vmatprep.subr.bf16.mxu0 %v2585_v20  ;;  %v2615_v19 = vld [vmem:[#allocation10 + $0x10] sm:$0xff]   ;;  %v2616_v20 = vld [vmem:[#allocation10 + $0x48] sm:$0xff]  }
 0x18c   : > { %1532 = vmatpush2.bf16.msra.mxu1 %v2580_v22  ;;  %1573 = vmatpush2.bf16.msra.mxu0 %v2583_v23  ;;  %v2617_v22 = vld [vmem:[#allocation10 + $0x8] sm:$0xff]   ;;  %v2618_v23 = vld [vmem:[#allocation10 + $0x40] sm:$0xff]  }
 0x18d   : > { %1533 = vmatprep.subr.bf16.mxu1 %v2588_v24  ;;  %1574 = vmatprep.subr.bf16.mxu0 %v2591_v25  ;;  %v2619_v24 = vld [vmem:[#allocation10] sm:$0xff]   ;;  %v2620_v25 = vld [vmem:[#allocation11 + $0x38] sm:$0xff]  }
 0x190   : > { %1534 = vmatpush2.bf16.msra.mxu1 %v2586_v26  ;;  %1575 = vmatpush2.bf16.msra.mxu0 %v2589_v27  ;;  %v2882_v26 = vmov 0.0   ;;  %v2621_v27 = vld [vmem:[#allocation11 + $0x30] sm:$0xff]  }
 0x191   : > { %1535 = vmatprep.subr.bf16.mxu1 %v2594_v28  ;;  %1576 = vmatprep.subr.bf16.mxu0 %v2597_v29  ;;  %v2622_v28 = vld [vmem:[#allocation11 + $0x28] sm:$0xff]   ;;  %v2623_v29 = vld [vmem:[#allocation11 + $0x20] sm:$0xff]  }
 0x194   : > { %1536 = vmatpush2.bf16.msra.mxu1 %v2592_v30  ;;  %1577 = vmatpush2.bf16.msra.mxu0 %v2595_v31  ;;  %v2624_v30 = vld [vmem:[#allocation11 + $0x18] sm:$0xff]   ;;  %v2218_v31 = vld.sshfl [vmem:[%s3207_s6] sm:$0x11 pattern:$0x75316420] }
 0x195   : > { %1537 = vmatprep.subr.bf16.mxu1 %v2600_v32  ;;  %1578 = vmatprep.subr.bf16.mxu0 %v2603_v33  ;;  %v1600_v32 = vcombine.high %v2218_v31, %v2218_v31  ;;  %v1607_v33 = vrot.slane %v2218_v31, %v3124_v16 }
 0x198   : > { %1538 = vmatpush2.bf16.msra.mxu1 %v2598_v34  ;;  %1579 = vmatpush2.bf16.msra.mxu0 %v2601_v35  ;;  %v1614_v34 = vrot.slane %v1600_v32, %v3124_v16  ;;  %v1616_v35 = vpack.i.b16 %v1607_v33, %v1607_v33 }
 0x199   : > { %2248 = vmatprep.subr.bf16.mxu1 %v2604_v36  ;;  %2279 = vmatprep.subr.bf16.mxu0 %v2882_v26 }
 0x19a   : > { %v1623_v36 = vpack.i.b16 %v1614_v34, %v1614_v34  ;;  %v1621_v40 = vrot.slane %v1616_v35, %v3128_v21 }
 0x19c   : > { %v1628_v45 = vrot.slane %v1623_v36, %v3128_v21 }
 0x21b   : > { %v1009_v47 = vpop.f32.mrf.mxu1  ;;  %v1050_v49 = vpop.f32.mrf.mxu0 }
 0x21c   : > { %v1057_v51 = vpack.c.bf16 %v1009_v47, %v1009_v47  ;;  %v1059_v52 = vpack.c.bf16 %v1050_v49, %v1050_v49 }
 0x21d   : > { %v1011_v55 = vpop.f32.mrf.mxu1  ;;  %v1052_v56 = vpop.f32.mrf.mxu0 }
 0x21e   : > { %v1058_v57 = vpack.c.bf16 %v1011_v55, %v1011_v55  ;;  %v1060_v58 = vpack.c.bf16 %v1052_v56, %v1052_v56  ;;  %v1115_v59 = vadd.bf16 %v1093_v48, %v1057_v51  ;;  %v1117_v60 = vadd.bf16 %v1107_v50, %v1059_v52  ;;  %v2626_v55 = vld [vmem:[#allocation11 + $0x8] sm:$0xff]   ;;  %v2627_v56 = vld [vmem:[#allocation11] sm:$0xff]  }
 0x21f   : > { %v1013_v61 = vpop.f32.mrf.mxu1  ;;  %v1054_v62 = vpop.f32.mrf.mxu0 }
 0x220   : > { %v1116_v63 = vadd.bf16 %v1100_v53, %v1058_v57  ;;  %v1118_v1 = vadd.bf16 %v1114_v54, %v1060_v58  ;;  %v1119_v7 = vmax.bf16 %v2880_v0, %v1115_v59  ;;  %v1121_v8 = vmax.bf16 %v2880_v0, %v1117_v60  ;;  %v2625_v54 = vld [vmem:[#allocation11 + $0x10] sm:$0xff]  }
 0x221   : > { %v1014_v2 = vpop.f32.mrf.mxu1  ;;  %v1055_v3 = vpop.f32.mrf.mxu0  ;;  %v1802_v57 = vld [vmem:[%s3209_s8] sm:$0x1] }
 0x222   : > { %v1120_v4 = vmax.bf16 %v2880_v0, %v1116_v63  ;;  %v1122_v5 = vmax.bf16 %v2880_v0, %v1118_v1  ;;  %v1804_v58 = vpack.i.b16 %v1802_v57, %v1802_v57 }
 0x224   : > { %1539 = vmatprep.mubr.bf16.mxu1 %v1120_v4  ;;  %1580 = vmatprep.mubr.bf16.mxu0 %v1122_v5  ;;  %v1809_v62 = vrot.slane %v1804_v58, %v3128_v21  ;;  %v2235_v5 = vld [vmem:[%s3211_s10] ss:$0 sm:$0xff] }
 0x225   : > { %1540 = vmatmul.mubr.bf16.vlgmr.msra.gmra.mxu1 %v1119_v7  ;;  %1581 = vmatmul.mubr.bf16.vlgmr.msra.gmra.mxu0 %v1121_v8 }
 0x226   : > { %2249 = vmatpush3.bf16.msra.mxu1 %v2605_v6  ;;  %2280 = vmatpush3.bf16.msra.mxu0 %v2620_v25 }
 0x227   : > { %2250 = vmatprep.subr.bf16.mxu1 %v2606_v9  ;;  %2281 = vmatprep.subr.bf16.mxu0 %v2882_v26 }
 0x228   : > { %2295 = vmatprep.mubr.msk.bf16.mxu0 %vm2883_vm1, %v2882_v26 }
 0x22a   : > { %2251 = vmatpush3.bf16.msra.mxu1 %v2607_v10  ;;  %2282 = vmatpush3.bf16.msra.mxu0 %v2621_v27 }
 0x22b   : > { %2252 = vmatprep.subr.bf16.mxu1 %v2608_v11  ;;  %2283 = vmatprep.subr.bf16.mxu0 %v2882_v26 }
 0x22e   : > { %2253 = vmatpush3.bf16.msra.mxu1 %v2609_v12  ;;  %2284 = vmatpush3.bf16.msra.mxu0 %v2622_v28 }
 0x22f   : > { %2254 = vmatprep.subr.bf16.mxu1 %v2610_v13  ;;  %2285 = vmatprep.subr.bf16.mxu0 %v2882_v26 }
 0x232   : > { %2255 = vmatpush3.bf16.msra.mxu1 %v2611_v14  ;;  %2286 = vmatpush3.bf16.msra.mxu0 %v2623_v29 }
 0x233   : > { %2256 = vmatprep.subr.bf16.mxu1 %v2612_v15  ;;  %2287 = vmatprep.subr.bf16.mxu0 %v2882_v26 }
 0x236   : > { %2257 = vmatpush3.bf16.msra.mxu1 %v2613_v17  ;;  %2288 = vmatpush3.bf16.msra.mxu0 %v2624_v30 }
 0x237   : > { %2258 = vmatprep.subr.bf16.mxu1 %v2614_v18  ;;  %2289 = vmatprep.subr.bf16.mxu0 %v2882_v26 }
 0x23a   : > { %2259 = vmatpush3.bf16.msra.mxu1 %v2615_v19  ;;  %2290 = vmatpush3.bf16.msra.mxu0 %v2625_v54 }
 0x23b   : > { %2260 = vmatprep.subr.bf16.mxu1 %v2616_v20  ;;  %2291 = vmatprep.subr.bf16.mxu0 %v2882_v26 }
 0x23e   : > { %2261 = vmatpush3.bf16.msra.mxu1 %v2617_v22  ;;  %2292 = vmatpush3.bf16.msra.mxu0 %v2626_v55 }
 0x23f   : > { %2262 = vmatprep.subr.bf16.mxu1 %v2618_v23  ;;  %2293 = vmatprep.subr.bf16.mxu0 %v2882_v26 }
 0x242   : > { %2263 = vmatpush3.bf16.msra.mxu1 %v2619_v24  ;;  %2294 = vmatpush3.bf16.msra.mxu0 %v2627_v56 }
 0x2e5   : > { %v1541_v37 = vpop.f32.mrf.mxu1  ;;  %v1582_v38 = vpop.f32.mrf.mxu0 }
 0x2e6   : > { %v1583_v39 = vadd.f32 %v1582_v38, %v1541_v37 }
 0x2e7   : > { %v1543_v41 = vpop.f32.mrf.mxu1  ;;  %v1584_v42 = vpop.f32.mrf.mxu0 }
 0x2e8   : > { %v1589_v43 = vpack.c.bf16 %v1583_v39, %v1583_v39  ;;  %v1585_v44 = vadd.f32 %v1584_v42, %v1543_v41 }
 0x2e9   : > { %v1545_v46 = vpop.f32.mrf.mxu1  ;;  %v1586_v47 = vpop.f32.mrf.mxu0 }
 0x2ea   : > { %v1590_v48 = vpack.c.bf16 %v1585_v44, %v1585_v44  ;;  %v1629_v49 = vadd.bf16 %v1621_v40, %v1589_v43 }
 0x2eb   : > { %v1546_v50 = vpop.f32.mrf.mxu1  ;;  %v1587_v51 = vpop.f32.mrf.mxu0 }
 0x2ec   : > { %v1630_v16 = vadd.bf16 %v1628_v45, %v1590_v48  ;;  %v1631_v53 = vmax.bf16 %v2880_v0, %v1629_v49 }
 0x2ee   : > { %v1632_v52 = vmax.bf16 %v2880_v0, %v1630_v16 }
 0x2f0   : > { %1793 = vmatprep.mubr.bf16.mxu1 %v1632_v52 }
 0x2f1   : > { %1794 = vmatmul.mubr.bf16.vlgmr.msra.gmra.mxu1 %v1631_v53 }
 0x3b1   : > { %v2264_v59 = vpop.f32.mrf.mxu1 }
 0x3b3   : > { %v2265_v60 = vpop.f32.mrf.mxu1 }
 0x3b4   : > { %v2266_v61 = vadd.f32 %v2265_v60, %v2264_v59 }
 0x3b5   : > { %v2267_v63 = vpop.f32.mrf.mxu1 }
 0x3b6   : > { %v1801_v1 = vpack.c.bf16 %v2266_v61, %v2266_v61 }
 0x3b7   : > { %v2268_v2 = vpop.f32.mrf.mxu1 }
 0x3b8   : > { %v1810_v3 = vadd.bf16 %v1809_v62, %v1801_v1 }
 0x3ba   : > { %v1811_v4 = vmax.bf16 %v2880_v0, %v1810_v3 }
 0x3bc   : > { %2296 = vmatmul.mubr.bf16.vlgmr.msra.gmra.mxu0 %v1811_v4 }
 0x47c   : > { %v1917_v6 = vpop.f32.mrf.mxu0 }
 0x47d   : > { %v1918_v7 = vadd.f32 %v2235_v5, %v1917_v6 }
 0x47e   : > { %v2297_v8 = vpop.f32.mrf.mxu0 }
 0x47f   : > { %1923 = vmax.xlane.f32.xlu0 %v1918_v7 }
 0x480   : > { %v1920_v9 = vpop.f32.mrf.mxu0 }
 0x482   : > { %v2298_v10 = vpop.f32.mrf.mxu0 }
 0x508   : > { %v1924_v21 = vpop.xlane.xlu0 %1923 }
 0x509   : > { %v1925_v11 = vsub.f32 %v1918_v7, %v1924_v21 }
 0x50b   : > { %v1926_v12 = vmul.f32 1.442695, %v1925_v11 }
 0x50d   : > { %2628 = vpow2.f32 %v1926_v12 }
 0x51a   : > { %v2629_v0 = vpop.eup %2628 }
 0x51b   : > { %1928 = vadd.xlane.f32.xlu0 %v2629_v0 }
 0x5a4   : > { %v1929_v13 = vpop.xlane.xlu0 %1928 }
 0x5a5   : > { %2630 = vrcp.f32 %v1929_v13 }
 0x5b2   : > { %v2631_v14 = vpop.eup %2630 }
 0x5b3   : > { %v1931_v15 = vmul.f32 %v2631_v14, %v2629_v0 }
 0x5b5   : > { %1932 = vst [vmem:[%s474_s28] sm:$0xff] %v1931_v15 }
 0x5b6   : > { %2803 = shalt.err (!%p2800_p1)
}
 0x5b7   : > { %s2804_s7 = scalar_lea.hbm %s1945_s3, 128  ;;  %s2808_s21 = scalar_lea.hbm %s3212_s11, 256 }
 0x5b8   : > { %p2805_p3 = scmp.ne.s32.totalorder %s1945_s3, %s2804_s7  ;;  %p2809_p6 = scmp.lt.s32.totalorder %s1945_s3, %s3212_s11 }
 0x5b9   : > { %p2810_p2 = scmp.lt.s32.totalorder %s2808_s21, %s2804_s7 }
 0x5ba   : > { %p2806_p4 = pnand %p2805_p3, %p3243_p11 }
 0x5bb   : > { %p2811_p7 = por %p2810_p2, %p2809_p6 }
 0x5bc   : > { %p2807_p12 = pneg %p2806_p4 }
 0x5be   : > { %p2812_p8 = pnand %p2811_p7, %p2807_p12 }
 0x5c0   : > { %2815 = shalt.err (!%p2812_p8)
}
 0x5c1   : > { %2321 = dma.vmem_to_hbm [thread:$0]  (%p3243_p11), %s1948_s9, 128, %s1945_s3, %s1934_s24  }
 0x5c2 PF: > { %s1959_s14 = sand.u32 1, %s2854_s17   ;;  %p3244_p13 = scmp.ne.s32.totalorder %s3233_s12, 0 }
 0x5c3   : > { %p3245_p0 = scmp.ge.s32.totalorder %s2866_s20, 2  ;;  %s1960_s28 = scalar_lea.sflag [#allocation4], %s1959_s14 }
 0x5c5   : > { %p2344_p5 = pnand %p3245_p0, %p3244_p13 }
 0x5c7   : > { %p2345_p9 = pneg %p2344_p5 }
 0x5c9   : > { %2849 = dma.done.wait (%p2345_p9), %s1960_s28, 128  }
 0x5ca   : > { %2851 = vsyncadd (%p2345_p9), %s1960_s28, 4294967168  ;;  %s3246_s22 = sld [smem:[#allocation19_spill]]  ;;  %p27_p10 = scmp.ge.s32.totalorder %s3041_s27, 4  }
 0x5cb   : > { %s3247_s17 = smov %s2858_s18  ;;  %s3248_s18 = smov %s2862_s19 }
 0x5cc   : > { %s3250_s20 = smov %s3041_s27  ;;  %29 = sbr.rel (!%p27_p10) target bundleno = 14 (0xe), region = 129 }
 0x5d0   : > { %s3249_s19 = smov %s3246_s22 }
 0x5d1   :  { %1965 = vsyncpa [#allocation3], 1 }
 0x5d2   :  { %1967 = vsyncpa [#allocation3 + $0x1], 1 }
 0x5d3   :  { %1968 = vsyncpa [#allocation6], 1 }
 0x5d4   :  { %1969 = vsyncpa [#allocation9], 1 }
 0x5d5   :  { %1970 = vsyncpa [#allocation12], 1 }
 0x5d6   :  { %1971 = vsyncpa [#allocation4], 1 }
 0x5d7   :  { %1973 = vsyncpa [#allocation4 + $0x1], 1 }

</bundles_post_ra>
